<compile_context>
chip_gen: v7x
topology: tpu7x:2x2x1
jax: 0.10.0
libtpu: 0.0.40
codegen_flags: <defaults>
</compile_context>

<pallas_src>
import math

import jax
import jax.numpy as jnp
from jax.experimental import pallas as pl
from jax.experimental.pallas import tpu as pltpu

LN_EPS = 1e-5  # PyTorch nn.LayerNorm default


def _mlp_block_kernel(x_ref, scale1_ref, shift_ref,
                      wp_ref, bp_ref,
                      w1_ref, b1_ref, w2_ref, b2_ref,
                      gamma_ref, beta_ref,
                      o_ref):
    TB, C, E = x_ref.shape            # static block shape
    M = TB * C                        # fused rows fed to the MLP GEMMs
    mm_dtype = wp_ref.dtype           # matmul operand dtype (bf16 or f32)

    x = x_ref[...].astype(jnp.float32)                      # (TB, C, E)

    # --- AdaLayerNorm: LayerNorm (no affine), one-pass stats, then modulation ---
    mu = jnp.mean(x, axis=-1, keepdims=True)
    ex2 = jnp.mean(x * x, axis=-1, keepdims=True)
    var = jnp.maximum(ex2 - mu * mu, 0.0)
    xn = (x - mu) * jax.lax.rsqrt(var + LN_EPS)
    # scale1 = (1 + scale) pre-folded in the wrapper; (TB, 1, E) broadcasts over C.
    x_mod = xn * scale1_ref[...] + shift_ref[...]            # (TB, C, E), f32

    resid = x_mod.reshape(M, E)                              # free when C % 8 == 0

    # --- proj: Linear over the channel axis, batched (C,C)@(C,E) per batch elem ---
    wp_b = jnp.broadcast_to(wp_ref[...], (TB, C, C))
    h = jax.lax.dot_general(
        wp_b, x_mod.astype(mm_dtype),
        dimension_numbers=(((2,), (1,)), ((0,), (0,))),
        preferred_element_type=jnp.float32)                  # (TB, C, E), f32 acc
    h = jnp.maximum(h + bp_ref[...][None], 0.0)              # bias + ReLU fused
    # TODO(synk): nn.Dropout layers are identity here (inference / eval mode).

    # --- mlp: fused GEMMs on the (TB*C, E) slab against batch-shared weights ---
    h2d = h.reshape(M, E).astype(mm_dtype)
    h1 = jnp.dot(h2d, w1_ref[...], preferred_element_type=jnp.float32) + b1_ref[...]
    h1 = h1 * jax.nn.sigmoid(h1)                             # SiLU in f32 (EUP)
    h2 = jnp.dot(h1.astype(mm_dtype), w2_ref[...],
                 preferred_element_type=jnp.float32) + b2_ref[...]

    # --- residual add + final LayerNorm (affine), one-pass stats, all f32 ---
    y = h2 + resid
    mu2 = jnp.mean(y, axis=-1, keepdims=True)
    ey2 = jnp.mean(y * y, axis=-1, keepdims=True)
    var2 = jnp.maximum(ey2 - mu2 * mu2, 0.0)
    yn = (y - mu2) * jax.lax.rsqrt(var2 + LN_EPS)
    o_ref[...] = (yn * gamma_ref[...] + beta_ref[...]).astype(o_ref.dtype)


def _pick_batch_tile(B, C):
    """Batch elements per grid step: target ~256 fused rows (fills the 256-wide
    MXU on v6e/v7x; two passes of the 128-wide MXU on v5e), but keep >= 2 grid
    steps when B >= 2 so the v7x megacore can shard the batch axis."""
    target_rows = 256
    tb = max(1, min(B, max(1, target_rows // max(C, 1))))
    if B >= 2 and tb >= B:
        tb = max(1, (B + 1) // 2)
    # Fused row count TB*C must be sublane-aligned (multiple of 8) so the flat
    # (TB*C, E) output block and the (TB,C,E)<->(TB*C,E) reshapes are cheap/legal.
    k = 8 // math.gcd(C, 8)
    tb = ((tb + k - 1) // k) * k
    return tb


def mlp_block_forward(x, timestep, params, *, matmul_dtype=jnp.bfloat16,
                      batch_tile=None):
    """x: (B, C, E) float32, timestep: (B,) float32."""
    B, C, E = x.shape

    # ---------- conditioning glue (plain JAX): sinusoidal emb -> SiLU -> Linear(E, 2E) ----------
    half = E // 2
    emb_scale = math.log(10000.0) / (half - 1)
    freqs = jnp.exp(jnp.arange(half, dtype=jnp.float32) * (-emb_scale))
    emb = timestep[:, None] * freqs[None, :]
    emb = jnp.concatenate([jnp.sin(emb), jnp.cos(emb)], axis=-1)         # (B, E)
    emb = jax.nn.silu(emb) @ params["w_ada"].T + params["b_ada"]         # (B, 2E)
    scale1 = (1.0 + emb[:, :E]).reshape(B, 1, E)    # pre-fold "1 + scale"
    shift = emb[:, E:].reshape(B, 1, E)

    # ---------- batch tiling (pad B to a multiple of TB) ----------
    TB = batch_tile if batch_tile is not None else _pick_batch_tile(B, C)
    n_blk = pl.cdiv(B, TB)
    Bp = n_blk * TB
    if Bp != B:
        pad = Bp - B
        x = jnp.pad(x, ((0, pad), (0, 0), (0, 0)))
        scale1 = jnp.pad(scale1, ((0, pad), (0, 0), (0, 0)), constant_values=1.0)
        shift = jnp.pad(shift, ((0, pad), (0, 0), (0, 0)))
    M = TB * C

    # ---------- weight layouts (no in-kernel transposes); matmul operands in matmul_dtype ----------
    wp = params["w_proj"].astype(matmul_dtype)                    # (C, C)
    bp = jnp.broadcast_to(params["b_proj"][:, None], (C, E)).astype(jnp.float32)
    w1t = params["w1"].T.astype(matmul_dtype)                     # (E, 4E)
    b1 = params["b1"].reshape(1, 4 * E).astype(jnp.float32)
    w2t = params["w2"].T.astype(matmul_dtype)                     # (4E, E)
    b2 = params["b2"].reshape(1, E).astype(jnp.float32)
    gamma = params["ln_gamma"].reshape(1, E).astype(jnp.float32)
    beta = params["ln_beta"].reshape(1, E).astype(jnp.float32)

    grid_spec = pltpu.PrefetchScalarGridSpec(
        num_scalar_prefetch=0,
        grid=(n_blk,),
        in_specs=[
            pl.BlockSpec((TB, C, E), lambda b: (b, 0, 0)),        # x        -> (TB, C, E)
            pl.BlockSpec((TB, 1, E), lambda b: (b, 0, 0)),        # 1+scale  -> (TB, 1, E)
            pl.BlockSpec((TB, 1, E), lambda b: (b, 0, 0)),        # shift    -> (TB, 1, E)
            # Grid-constant weights: constant index maps => fetched once, VMEM-resident.
            pl.BlockSpec((C, C), lambda b: (0, 0)),               # Wp
            pl.BlockSpec((C, E), lambda b: (0, 0)),               # bp (pre-broadcast)
            pl.BlockSpec((E, 4 * E), lambda b: (0, 0)),           # W1^T
            pl.BlockSpec((1, 4 * E), lambda b: (0, 0)),           # b1
            pl.BlockSpec((4 * E, E), lambda b: (0, 0)),           # W2^T
            pl.BlockSpec((1, E), lambda b: (0, 0)),               # b2
            pl.BlockSpec((1, E), lambda b: (0, 0)),               # gamma
            pl.BlockSpec((1, E), lambda b: (0, 0)),               # beta
        ],
        out_specs=pl.BlockSpec((M, E), lambda b: (b, 0)),         # flat (TB*C, E) slab
    )

    out_flat = pl.pallas_call(
        _mlp_block_kernel,
        out_shape=jax.ShapeDtypeStruct((Bp * C, E), x.dtype),
        grid_spec=grid_spec,
        compiler_params=pltpu.CompilerParams(
            dimension_semantics=("parallel",)),                   # v7x: shard batch blocks over 2 TCs
    )(x, scale1, shift, wp, bp, w1t, b1, w2t, b2, gamma, beta)

    return out_flat.reshape(Bp, C, E)[:B]


def _reference_forward(x, timestep, params):
    """Pure-JAX f32 reference of the PyTorch MLPBlock forward (eval mode)."""
    B, C, E = x.shape
    half = E // 2
    emb_scale = math.log(10000.0) / (half - 1)
    freqs = jnp.exp(jnp.arange(half, dtype=jnp.float32) * (-emb_scale))
    emb = timestep[:, None] * freqs[None, :]
    emb = jnp.concatenate([jnp.sin(emb), jnp.cos(emb)], axis=-1)
    emb = jax.nn.silu(emb) @ params["w_ada"].T + params["b_ada"]
    scale = emb[:, None, :E]
    shift = emb[:, None, E:]

    def ln(v, eps=LN_EPS):
        mu = v.mean(-1, keepdims=True)
        var = ((v - mu) ** 2).mean(-1, keepdims=True)
        return (v - mu) / jnp.sqrt(var + eps)

    xm = ln(x) * (1.0 + scale) + shift
    residual = xm
    h = jnp.einsum("bce,oc->boe", xm, params["w_proj"]) + params["b_proj"][None, :, None]
    h = jax.nn.relu(h)
    h1 = jax.nn.silu(h @ params["w1"].T + params["b1"])
    h2 = h1 @ params["w2"].T + params["b2"]
    y = ln(h2 + residual)
    return y * params["ln_gamma"] + params["ln_beta"]


def _init_params(key, n_channel, n_embd):
    ks = jax.random.split(key, 8)
    def u(k, shape, fan_in):
        bound = 1.0 / math.sqrt(fan_in)
        return jax.random.uniform(k, shape, jnp.float32, -bound, bound)
    return {
        "w_ada": u(ks[0], (2 * n_embd, n_embd), n_embd),
        "b_ada": u(ks[1], (2 * n_embd,), n_embd),
        "w_proj": u(ks[2], (n_channel, n_channel), n_channel),
        "b_proj": u(ks[3], (n_channel,), n_channel),
        "w1": u(ks[4], (4 * n_embd, n_embd), n_embd),
        "b1": u(ks[5], (4 * n_embd,), n_embd),
        "w2": u(ks[6], (n_embd, 4 * n_embd), 4 * n_embd),
        "b2": u(ks[7], (n_embd,), 4 * n_embd),
        "ln_gamma": jnp.ones((n_embd,), jnp.float32),
        "ln_beta": jnp.zeros((n_embd,), jnp.float32),
    }


if __name__ == "__main__":
    B, C, E = 2, 8, 32   # batch, n_channel, n_embd (small, consistent with the module)
    key = jax.random.PRNGKey(0)
    kx, kt, kp = jax.random.split(key, 3)
    x = jax.random.normal(kx, (B, C, E), jnp.float32)
    timestep = jax.random.randint(kt, (B,), 0, 1000).astype(jnp.float32)
    params = _init_params(kp, C, E)

    ref = _reference_forward(x, timestep, params)

    # f32-operand path: matches the pure-f32 reference tightly.
    out_f32 = jax.block_until_ready(
        mlp_block_forward(x, timestep, params, matmul_dtype=jnp.float32))
    assert out_f32.shape == (B, C, E)
    assert jnp.allclose(out_f32, ref, atol=1e-4, rtol=1e-4), \
        float(jnp.abs(out_f32 - ref).max())

    # bf16-operand MXU path (recommended on v6e/v7x): f32 accumulation,
    # f32 LayerNorm / residual / affine, so only operand rounding differs.
    out_bf16 = jax.block_until_ready(
        mlp_block_forward(x, timestep, params, matmul_dtype=jnp.bfloat16))
    assert out_bf16.shape == (B, C, E)
    assert jnp.allclose(out_bf16, ref, atol=5e-2, rtol=5e-2), \
        float(jnp.abs(out_bf16 - ref).max())

    print("KERNEL_OK")
</pallas_src>

<mosaic_0001>
module attributes {stable_mosaic.version = 11 : i64} {
  func.func @_mlp_block_kernel(%arg0: i32, %arg1: memref<1x8x32xf32, #tpu.memory_space<vmem>>, %arg2: memref<1x1x32xf32, #tpu.memory_space<vmem>>, %arg3: memref<1x1x32xf32, #tpu.memory_space<vmem>>, %arg4: memref<8x8xf32, #tpu.memory_space<vmem>>, %arg5: memref<8x32xf32, #tpu.memory_space<vmem>>, %arg6: memref<32x128xf32, #tpu.memory_space<vmem>>, %arg7: memref<1x128xf32, #tpu.memory_space<vmem>>, %arg8: memref<128x32xf32, #tpu.memory_space<vmem>>, %arg9: memref<1x32xf32, #tpu.memory_space<vmem>>, %arg10: memref<1x32xf32, #tpu.memory_space<vmem>>, %arg11: memref<1x32xf32, #tpu.memory_space<vmem>>, %arg12: memref<8x32xf32, #tpu.memory_space<vmem>>) attributes {dimension_semantics = [#tpu.dimension_semantics<parallel>], iteration_bounds = array<i64: 2>, scalar_prefetch = 0 : i64, scratch_operands = 0 : i64, tpu.core_type = #tpu.core_type<tc>, window_params = [{transform_indices = @transform_0, window_bounds = array<i64: 1, 8, 32>}, {transform_indices = @transform_1, window_bounds = array<i64: 1, 1, 32>}, {transform_indices = @transform_2, window_bounds = array<i64: 1, 1, 32>}, {pipeline_mode = #tpu.pipeline_mode<synchronous>, transform_indices = @transform_3, window_bounds = array<i64: 8, 8>}, {pipeline_mode = #tpu.pipeline_mode<synchronous>, transform_indices = @transform_4, window_bounds = array<i64: 8, 32>}, {pipeline_mode = #tpu.pipeline_mode<synchronous>, transform_indices = @transform_5, window_bounds = array<i64: 32, 128>}, {pipeline_mode = #tpu.pipeline_mode<synchronous>, transform_indices = @transform_6, window_bounds = array<i64: 1, 128>}, {pipeline_mode = #tpu.pipeline_mode<synchronous>, transform_indices = @transform_7, window_bounds = array<i64: 128, 32>}, {pipeline_mode = #tpu.pipeline_mode<synchronous>, transform_indices = @transform_8, window_bounds = array<i64: 1, 32>}, {pipeline_mode = #tpu.pipeline_mode<synchronous>, transform_indices = @transform_9, window_bounds = array<i64: 1, 32>}, {pipeline_mode = #tpu.pipeline_mode<synchronous>, transform_indices = @transform_10, window_bounds = array<i64: 1, 32>}, {transform_indices = @transform_11, window_bounds = array<i64: 8, 32>}]} {
    %c0 = arith.constant 0 : index
    %c0_0 = arith.constant 0 : index
    %c0_1 = arith.constant 0 : index
    %0 = vector.load %arg1[%c0, %c0_0, %c0_1] : memref<1x8x32xf32, #tpu.memory_space<vmem>>, vector<1x8x32xf32>
    %cst = arith.constant dense<0.000000e+00> : vector<1x8xf32>
    %1 = vector.multi_reduction <add>, %0, %cst [2] : vector<1x8x32xf32> to vector<1x8xf32>
    %2 = vector.shape_cast %1 : vector<1x8xf32> to vector<1x8x1xf32>
    %cst_2 = arith.constant 3.200000e+01 : f32
    %3 = vector.broadcast %cst_2 : f32 to vector<1x8x1xf32>
    %4 = arith.divf %2, %3 : vector<1x8x1xf32>
    %5 = arith.mulf %0, %0 : vector<1x8x32xf32>
    %cst_3 = arith.constant dense<0.000000e+00> : vector<1x8xf32>
    %6 = vector.multi_reduction <add>, %5, %cst_3 [2] : vector<1x8x32xf32> to vector<1x8xf32>
    %7 = vector.shape_cast %6 : vector<1x8xf32> to vector<1x8x1xf32>
    %cst_4 = arith.constant 3.200000e+01 : f32
    %8 = vector.broadcast %cst_4 : f32 to vector<1x8x1xf32>
    %9 = arith.divf %7, %8 : vector<1x8x1xf32>
    %10 = arith.mulf %4, %4 : vector<1x8x1xf32>
    %11 = arith.subf %9, %10 : vector<1x8x1xf32>
    %cst_5 = arith.constant 0.000000e+00 : f32
    %12 = vector.broadcast %cst_5 : f32 to vector<1x8x1xf32>
    %13 = arith.maximumf %11, %12 : vector<1x8x1xf32>
    %14 = vector.broadcast %4 : vector<1x8x1xf32> to vector<1x8x32xf32>
    %15 = arith.subf %0, %14 : vector<1x8x32xf32>
    %cst_6 = arith.constant 9.99999974E-6 : f32
    %16 = vector.broadcast %cst_6 : f32 to vector<1x8x1xf32>
    %17 = arith.addf %13, %16 : vector<1x8x1xf32>
    %18 = math.rsqrt %17 : vector<1x8x1xf32>
    %19 = vector.broadcast %18 : vector<1x8x1xf32> to vector<1x8x32xf32>
    %20 = arith.mulf %15, %19 : vector<1x8x32xf32>
    %c0_7 = arith.constant 0 : index
    %c0_8 = arith.constant 0 : index
    %c0_9 = arith.constant 0 : index
    %21 = vector.load %arg2[%c0_7, %c0_8, %c0_9] : memref<1x1x32xf32, #tpu.memory_space<vmem>>, vector<1x1x32xf32>
    %22 = vector.broadcast %21 : vector<1x1x32xf32> to vector<1x8x32xf32>
    %23 = arith.mulf %20, %22 : vector<1x8x32xf32>
    %c0_10 = arith.constant 0 : index
    %c0_11 = arith.constant 0 : index
    %c0_12 = arith.constant 0 : index
    %24 = vector.load %arg3[%c0_10, %c0_11, %c0_12] : memref<1x1x32xf32, #tpu.memory_space<vmem>>, vector<1x1x32xf32>
    %25 = vector.broadcast %24 : vector<1x1x32xf32> to vector<1x8x32xf32>
    %26 = arith.addf %23, %25 : vector<1x8x32xf32>
    %27 = vector.shape_cast %26 : vector<1x8x32xf32> to vector<8x32xf32>
    %c0_13 = arith.constant 0 : index
    %c0_14 = arith.constant 0 : index
    %28 = vector.load %arg4[%c0_13, %c0_14] : memref<8x8xf32, #tpu.memory_space<vmem>>, vector<8x8xf32>
    %29 = vector.shape_cast %28 : vector<8x8xf32> to vector<1x8x8xf32>
    %cst_15 = arith.constant dense<0.000000e+00> : vector<1x8x32xf32>
    %30 = tpu.matmul %29, %26, %cst_15 {dimension_numbers = #tpu.dot_dimension_numbers<[2], [1], [1], [2], [0, 0, 0, 1, 1, 2], [0], [0]>} : vector<1x8x8xf32>, vector<1x8x32xf32>, vector<1x8x32xf32> -> vector<1x8x32xf32>
    %c0_16 = arith.constant 0 : index
    %c0_17 = arith.constant 0 : index
    %31 = vector.load %arg5[%c0_16, %c0_17] : memref<8x32xf32, #tpu.memory_space<vmem>>, vector<8x32xf32>
    %32 = vector.shape_cast %31 : vector<8x32xf32> to vector<1x8x32xf32>
    %33 = arith.addf %30, %32 : vector<1x8x32xf32>
    %cst_18 = arith.constant 0.000000e+00 : f32
    %34 = vector.broadcast %cst_18 : f32 to vector<1x8x32xf32>
    %35 = arith.maximumf %33, %34 : vector<1x8x32xf32>
    %36 = vector.shape_cast %35 : vector<1x8x32xf32> to vector<8x32xf32>
    %c0_19 = arith.constant 0 : index
    %c0_20 = arith.constant 0 : index
    %37 = vector.load %arg6[%c0_19, %c0_20] : memref<32x128xf32, #tpu.memory_space<vmem>>, vector<32x128xf32>
    %cst_21 = arith.constant dense<0.000000e+00> : vector<8x128xf32>
    %38 = tpu.matmul %36, %37, %cst_21 {dimension_numbers = #tpu.dot_dimension_numbers<[1], [0], [0], [1], [0, 0, 1, 1], [], []>} : vector<8x32xf32>, vector<32x128xf32>, vector<8x128xf32> -> vector<8x128xf32>
    %c0_22 = arith.constant 0 : index
    %c0_23 = arith.constant 0 : index
    %39 = vector.load %arg7[%c0_22, %c0_23] : memref<1x128xf32, #tpu.memory_space<vmem>>, vector<1x128xf32>
    %40 = vector.broadcast %39 : vector<1x128xf32> to vector<8x128xf32>
    %41 = arith.addf %38, %40 : vector<8x128xf32>
    %42 = arith.negf %41 : vector<8x128xf32>
    %43 = math.exp %42 : vector<8x128xf32>
    %cst_24 = arith.constant 1.000000e+00 : f32
    %44 = vector.broadcast %cst_24 : f32 to vector<8x128xf32>
    %45 = arith.addf %44, %43 : vector<8x128xf32>
    %46 = arith.divf %44, %45 : vector<8x128xf32>
    %47 = arith.mulf %41, %46 : vector<8x128xf32>
    %c0_25 = arith.constant 0 : index
    %c0_26 = arith.constant 0 : index
    %48 = vector.load %arg8[%c0_25, %c0_26] : memref<128x32xf32, #tpu.memory_space<vmem>>, vector<128x32xf32>
    %cst_27 = arith.constant dense<0.000000e+00> : vector<8x32xf32>
    %49 = tpu.matmul %47, %48, %cst_27 {dimension_numbers = #tpu.dot_dimension_numbers<[1], [0], [0], [1], [0, 0, 1, 1], [], []>} : vector<8x128xf32>, vector<128x32xf32>, vector<8x32xf32> -> vector<8x32xf32>
    %c0_28 = arith.constant 0 : index
    %c0_29 = arith.constant 0 : index
    %50 = vector.load %arg9[%c0_28, %c0_29] : memref<1x32xf32, #tpu.memory_space<vmem>>, vector<1x32xf32>
    %51 = vector.broadcast %50 : vector<1x32xf32> to vector<8x32xf32>
    %52 = arith.addf %49, %51 : vector<8x32xf32>
    %53 = arith.addf %52, %27 : vector<8x32xf32>
    %cst_30 = arith.constant dense<0.000000e+00> : vector<8xf32>
    %54 = vector.multi_reduction <add>, %53, %cst_30 [1] : vector<8x32xf32> to vector<8xf32>
    %55 = vector.shape_cast %54 : vector<8xf32> to vector<8x1xf32>
    %cst_31 = arith.constant 3.200000e+01 : f32
    %56 = vector.broadcast %cst_31 : f32 to vector<8x1xf32>
    %57 = arith.divf %55, %56 : vector<8x1xf32>
    %58 = arith.mulf %53, %53 : vector<8x32xf32>
    %cst_32 = arith.constant dense<0.000000e+00> : vector<8xf32>
    %59 = vector.multi_reduction <add>, %58, %cst_32 [1] : vector<8x32xf32> to vector<8xf32>
    %60 = vector.shape_cast %59 : vector<8xf32> to vector<8x1xf32>
    %cst_33 = arith.constant 3.200000e+01 : f32
    %61 = vector.broadcast %cst_33 : f32 to vector<8x1xf32>
    %62 = arith.divf %60, %61 : vector<8x1xf32>
    %63 = arith.mulf %57, %57 : vector<8x1xf32>
    %64 = arith.subf %62, %63 : vector<8x1xf32>
    %cst_34 = arith.constant 0.000000e+00 : f32
    %65 = vector.broadcast %cst_34 : f32 to vector<8x1xf32>
    %66 = arith.maximumf %64, %65 : vector<8x1xf32>
    %67 = vector.broadcast %57 : vector<8x1xf32> to vector<8x32xf32>
    %68 = arith.subf %53, %67 : vector<8x32xf32>
    %cst_35 = arith.constant 9.99999974E-6 : f32
    %69 = vector.broadcast %cst_35 : f32 to vector<8x1xf32>
    %70 = arith.addf %66, %69 : vector<8x1xf32>
    %71 = math.rsqrt %70 : vector<8x1xf32>
    %72 = vector.broadcast %71 : vector<8x1xf32> to vector<8x32xf32>
    %73 = arith.mulf %68, %72 : vector<8x32xf32>
    %c0_36 = arith.constant 0 : index
    %c0_37 = arith.constant 0 : index
    %74 = vector.load %arg10[%c0_36, %c0_37] : memref<1x32xf32, #tpu.memory_space<vmem>>, vector<1x32xf32>
    %75 = vector.broadcast %74 : vector<1x32xf32> to vector<8x32xf32>
    %76 = arith.mulf %73, %75 : vector<8x32xf32>
    %c0_38 = arith.constant 0 : index
    %c0_39 = arith.constant 0 : index
    %77 = vector.load %arg11[%c0_38, %c0_39] : memref<1x32xf32, #tpu.memory_space<vmem>>, vector<1x32xf32>
    %78 = vector.broadcast %77 : vector<1x32xf32> to vector<8x32xf32>
    %79 = arith.addf %76, %78 : vector<8x32xf32>
    %c0_40 = arith.constant 0 : index
    %c0_41 = arith.constant 0 : index
    %80 = vector.load %arg12[%c0_40, %c0_41] : memref<8x32xf32, #tpu.memory_space<vmem>>, vector<8x32xf32>
    tpu.vector_store %arg12[%c0_40, %c0_41], %79 {strides = array<i32>} : memref<8x32xf32, #tpu.memory_space<vmem>>, vector<8x32xf32>,
    return
  }
  func.func @transform_0(%arg0: i32) -> (i32, i32, i32) {
    %c0_i32 = arith.constant 0 : i32
    %c0_i32_0 = arith.constant 0 : i32
    %c0_i32_1 = arith.constant 0 : i32
    return %arg0, %c0_i32, %c0_i32_0 : i32, i32, i32
  }
  func.func @transform_1(%arg0: i32) -> (i32, i32, i32) {
    %c0_i32 = arith.constant 0 : i32
    %c0_i32_0 = arith.constant 0 : i32
    %c0_i32_1 = arith.constant 0 : i32
    return %arg0, %c0_i32, %c0_i32_0 : i32, i32, i32
  }
  func.func @transform_2(%arg0: i32) -> (i32, i32, i32) {
    %c0_i32 = arith.constant 0 : i32
    %c0_i32_0 = arith.constant 0 : i32
    %c0_i32_1 = arith.constant 0 : i32
    return %arg0, %c0_i32, %c0_i32_0 : i32, i32, i32
  }
  func.func @transform_3(%arg0: i32) -> (i32, i32) {
    %c0_i32 = arith.constant 0 : i32
    %c0_i32_0 = arith.constant 0 : i32
    %c0_i32_1 = arith.constant 0 : i32
    return %c0_i32, %c0_i32_0 : i32, i32
  }
  func.func @transform_4(%arg0: i32) -> (i32, i32) {
    %c0_i32 = arith.constant 0 : i32
    %c0_i32_0 = arith.constant 0 : i32
    %c0_i32_1 = arith.constant 0 : i32
    return %c0_i32, %c0_i32_0 : i32, i32
  }
  func.func @transform_5(%arg0: i32) -> (i32, i32) {
    %c0_i32 = arith.constant 0 : i32
    %c0_i32_0 = arith.constant 0 : i32
    %c0_i32_1 = arith.constant 0 : i32
    return %c0_i32, %c0_i32_0 : i32, i32
  }
  func.func @transform_6(%arg0: i32) -> (i32, i32) {
    %c0_i32 = arith.constant 0 : i32
    %c0_i32_0 = arith.constant 0 : i32
    %c0_i32_1 = arith.constant 0 : i32
    return %c0_i32, %c0_i32_0 : i32, i32
  }
  func.func @transform_7(%arg0: i32) -> (i32, i32) {
    %c0_i32 = arith.constant 0 : i32
    %c0_i32_0 = arith.constant 0 : i32
    %c0_i32_1 = arith.constant 0 : i32
    return %c0_i32, %c0_i32_0 : i32, i32
  }
  func.func @transform_8(%arg0: i32) -> (i32, i32) {
    %c0_i32 = arith.constant 0 : i32
    %c0_i32_0 = arith.constant 0 : i32
    %c0_i32_1 = arith.constant 0 : i32
    return %c0_i32, %c0_i32_0 : i32, i32
  }
  func.func @transform_9(%arg0: i32) -> (i32, i32) {
    %c0_i32 = arith.constant 0 : i32
    %c0_i32_0 = arith.constant 0 : i32
    %c0_i32_1 = arith.constant 0 : i32
    return %c0_i32, %c0_i32_0 : i32, i32
  }
  func.func @transform_10(%arg0: i32) -> (i32, i32) {
    %c0_i32 = arith.constant 0 : i32
    %c0_i32_0 = arith.constant 0 : i32
    %c0_i32_1 = arith.constant 0 : i32
    return %c0_i32, %c0_i32_0 : i32, i32
  }
  func.func @transform_11(%arg0: i32) -> (i32, i32) {
    %c0_i32 = arith.constant 0 : i32
    %c0_i32_0 = arith.constant 0 : i32
    return %arg0, %c0_i32 : i32, i32
  }
}

</mosaic_0001>

<bundles_post_ra>
// kernel: tpu_custom_call.1
= control target key start
LH: loop header
LB: loop body
LE: loop exit
PB: predicated region body
PF: predicated region fallthrough
CT: control target
= control target key end

     0   :  { %s1345_s0 = inlined_call_operand.vmem [shape: f32[2,8,32], index: 0, kind: input, shape index: {}]   ;;  %s1346_s1 = inlined_call_operand.vmem [shape: f32[2,1,32], index: 1, kind: input, shape index: {}]   ;;  %s1347_s2 = inlined_call_operand.vmem [shape: f32[2,1,32], index: 2, kind: input, shape index: {}]   ;;  %s1348_s3 = inlined_call_operand.vmem [shape: f32[8,8], index: 3, kind: input, shape index: {}]   ;;  %s1349_s4 = inlined_call_operand.vmem [shape: f32[8,32], index: 4, kind: input, shape index: {}]   ;;  %s1350_s5 = inlined_call_operand.vmem [shape: f32[32,128], index: 5, kind: input, shape index: {}]   ;;  %s1351_s6 = inlined_call_operand.vmem [shape: f32[1,128], index: 6, kind: input, shape index: {}]   ;;  %s1352_s7 = inlined_call_operand.vmem [shape: f32[128,32], index: 7, kind: input, shape index: {}]   ;;  %s1353_s8 = inlined_call_operand.vmem [shape: f32[1,32], index: 8, kind: input, shape index: {}]   ;;  %s1354_s9 = inlined_call_operand.vmem [shape: f32[1,32], index: 9, kind: input, shape index: {}]   ;;  %s1355_s10 = inlined_call_operand.vmem [shape: f32[1,32], index: 10, kind: input, shape index: {}]   ;;  %s1356_s11 = inlined_call_operand.hbm [shape: f32[16,32], index: 11, kind: output, shape index: {}]  }
   0x1   :  { %1357 = sst [smem:[#allocation5_spill]] %s1345_s0 }
   0x2   :  { %1358 = sst [smem:[#allocation6_spill]] %s1346_s1 }
   0x3   :  { %16 = vsyncpa [#allocation3], 0 }
   0x4   :  { %18 = vsyncpa [#allocation3 + $0x1], 0  ;;  %s1133_s17 = smov 0   ;;  %s1135_s18 = smov 0  }
   0x5   :  { %s1137_s19 = smov 0   ;;  %s1139_s20 = smov 0  }
   0x6 LB: > { %s1154_s21 = sadd.s32 4294967295, %s1067_s20   ;;  %s831_s22 = sadd.s32 4294967294, %s1067_s20   ;;  %s1067_s20 = sphi %s1139_s20, %s1366_s20   ;;  %s1063_s19 = sphi %s1137_s19, %s1365_s19   ;;  %s1059_s18 = sphi %s1135_s18, %s1364_s18   ;;  %s1055_s17 = sphi %s1133_s17, %s1363_s17  }
   0x7   : > { %s1158_s23 = sadd.s32 1, %s1067_s20   ;;  %s277_s24 = sadd.s32 1, %s1063_s19 }
   0x8   : > { %s274_s25 = ssub.s32 %s1067_s20, %s1158_s23  ;;  %p287_p0 = scmp.ne.s32.totalorder %s1063_s19, %s1059_s18 }
   0x9   : > { %p275_p1 = scmp.eq.s32.totalorder %s274_s25, 0  ;;  %p288_p2 = scmp.eq.s32.totalorder %s1154_s21, 1 }
   0xa   : > { %p293_p3 = scmp.ne.s32.totalorder %s1059_s18, %s1055_s17  ;;  %p294_p4 = scmp.eq.s32.totalorder %s831_s22, 1 }
   0xb   : > { %s1169_s26 = scalar_select %p275_p1, %s1063_s19, %s277_s24  }
   0xc   : > { %p1171_p5 = por %p288_p2, %p287_p0  ;;  %p1175_p6 = por %p294_p4, %p293_p3 }
   0xd   : > { %p834_p7 = scmp.ge.s32.totalorder %s1067_s20, 1  ;;  %p355_p8 = scmp.lt.s32.totalorder %s1067_s20, 3 }
   0xf   : > { %p356_p9 = pnand %p834_p7, %p355_p8 }
  0x10   : > { %p400_p10 = scmp.lt.s32.totalorder (!%p356_p9), %s1154_s21, 1  ;;  %vm411_vm0 = vcmask (!%p356_p9), 261120   ;;  %s1361_s0 = sld [smem:[#allocation5_spill]] (!%p356_p9)  ;;  %v1069_v4 = vmov (!%p356_p9), 0.0   ;;  %vm1070_vm1 = vmmov (!%p356_p9), 0   ;;  %v1071_v5 = vmov (!%p356_p9), 0.0|0.0  }
  0x11   : > { %359 = sbr.rel (%p356_p9) target bundleno = 1062 (0x426), region = 64  ;;  %874 = vmatprep.subr.mxu1 (!%p356_p9), %v1069_v4  ;;  %876 = vmatprep.mubr.msk.f32.mxu1 (!%p356_p9), %vm1070_vm1, %v1069_v4  ;;  %s1362_s1 = sld [smem:[#allocation6_spill]] (!%p356_p9)  ;;  %v522_v19 = vld [vmem:[%s1350_s5] sm:$0xff] (!%p356_p9)  ;;  %v523_v20 = vld [vmem:[%s1350_s5 + $0x8] sm:$0xff] (!%p356_p9)  ;;  %vm447_vm2 = vcmask (!%p356_p9), 64512   ;;  %v524_v25 = vld [vmem:[%s1350_s5 + $0x10] sm:$0xff] (!%p356_p9) }
  0x12   : > { %922 = vmatprep.mubr.msk.f32.mxu0 (!%p356_p9), %vm1070_vm1, %v1069_v4  ;;  %931 = vmatprep.subr.bf16.mxu0 (!%p356_p9), %v1071_v5  ;;  %v445_v23 = vld [vmem:[%s1348_s3] sm:$0xff] (!%p356_p9)  ;;  %v926_v24 = vpack.c.bf16 (!%p356_p9), %v523_v20, %v522_v19  ;;  %v525_v26 = vld [vmem:[%s1350_s5 + $0x18] sm:$0xff] (!%p356_p9)  ;;  %v614_v34 = vld [vmem:[%s1352_s7 + $0x8] sm:$0xff] (!%p356_p9)  ;;  %s397_s15 = sand.u32 (!%p356_p9), 1, %s1059_s18   ;;  %s847_s25 = sshll.u32 (!%p356_p9), %s1154_s21, 7 }
  0x13   : > { %v929_v27 = vpack.c.bf16 (!%p356_p9), %v525_v26, %v524_v25  ;;  %v446_v28 = vld [vmem:[%s1349_s4] sm:$0xff] (!%p356_p9)  ;;  %v615_v36 = vld [vmem:[%s1352_s7 + $0x10] sm:$0xff] (!%p356_p9)  ;;  %v616_v37 = vld [vmem:[%s1352_s7 + $0x18] sm:$0xff] (!%p356_p9)  ;;  %s835_s16 = sshll.u32 (!%p356_p9), %s397_s15, 3 }
  0x14   : > { %v613_v33 = vld [vmem:[%s1352_s7] sm:$0xff] (!%p356_p9)  ;;  %v935_v38 = vpack.c.bf16 (!%p356_p9), %v616_v37, %v615_v36  ;;  %v618_v40 = vld [vmem:[%s1352_s7 + $0x28] sm:$0xff] (!%p356_p9)  ;;  %v619_v42 = vld [vmem:[%s1352_s7 + $0x30] sm:$0xff] (!%p356_p9) }
  0x15   : > { %v932_v35 = vpack.c.bf16 (!%p356_p9), %v614_v34, %v613_v33  ;;  %v617_v39 = vld [vmem:[%s1352_s7 + $0x20] sm:$0xff] (!%p356_p9)  ;;  %v620_v43 = vld [vmem:[%s1352_s7 + $0x38] sm:$0xff] (!%p356_p9)  ;;  %v622_v46 = vld [vmem:[%s1352_s7 + $0x48] sm:$0xff] (!%p356_p9) }
  0x16   : > { %v938_v41 = vpack.c.bf16 (!%p356_p9), %v618_v40, %v617_v39  ;;  %v941_v44 = vpack.c.bf16 (!%p356_p9), %v620_v43, %v619_v42  ;;  %v621_v45 = vld [vmem:[%s1352_s7 + $0x40] sm:$0xff] (!%p356_p9)  ;;  %v623_v48 = vld [vmem:[%s1352_s7 + $0x50] sm:$0xff] (!%p356_p9)  ;;  %v624_v49 = vld [vmem:[%s1352_s7 + $0x58] sm:$0xff] (!%p356_p9) }
  0x17   : > { %933 = vmatpush3.bf16.msra.mxu0 (!%p356_p9), %v932_v35  ;;  %v944_v47 = vpack.c.bf16 (!%p356_p9), %v622_v46, %v621_v45  ;;  %v947_v50 = vpack.c.bf16 (!%p356_p9), %v624_v49, %v623_v48  ;;  %v625_v51 = vld [vmem:[%s1352_s7 + $0x60] sm:$0xff] (!%p356_p9)  ;;  %v626_v52 = vld [vmem:[%s1352_s7 + $0x68] sm:$0xff] (!%p356_p9)  ;;  %v627_v54 = vld [vmem:[%s1352_s7 + $0x70] sm:$0xff] (!%p356_p9) }
  0x18   : > { %s1183_s29 = scalar_select %p400_p10, %s1154_s21, 1  ;;  %934 = vmatprep.subr.bf16.mxu0 %v1071_v5  ;;  %v950_v53 = vpack.c.bf16 %v626_v52, %v625_v51  ;;  %v628_v55 = vld [vmem:[%s1352_s7 + $0x78] sm:$0xff]  ;;  %v840_v57 = vld [vmem:[%s1351_s6] ss:$0 sm:$0xff] }
  0x19   : > { %v953_v56 = vpack.c.bf16 %v628_v55, %v627_v54  ;;  %v844_v20 = vld [vmem:[%s1354_s9] ss:$0 sm:$0xff]  ;;  %s1072_s21 = smov [#allocation2]  }
  0x1a   : > { %s836_s30 = sshll.u32 %s1183_s29, 3  ;;  %s406_s22 = scalar_lea.vmem %s1362_s1, %s1183_s29 }
  0x1b   : > { %s403_s14 = scalar_lea.vmem %s1361_s0, %s836_s30  ;;  %s409_s30 = scalar_lea.vmem %s1347_s2, %s1183_s29  ;;  %v837_v16 = vld [vmem:[%s406_s22] ss:$0 sm:$0xff]  ;;  %936 = vmatpush3.bf16.msra.mxu0 %v935_v38 }
  0x1c   : > { %v410_v0 = vld [vmem:[%s403_s14] sm:$0xff]  ;;  %937 = vmatprep.subr.bf16.mxu0 %v1071_v5  ;;  %s1302_s1 = scalar_lea.hbm %s1356_s11, %s847_s25  ;;  %s741_s0 = scalar_lea.sflag [#allocation3], %s397_s15 }
  0x1d   : > { %v412_v1 = vsel %vm411_vm0, %v410_v0, 0.0  ;;  %v417_v2 = vmul.f32 %v410_v0, %v410_v0  ;;  %v838_v18 = vld [vmem:[%s409_s30] ss:$0 sm:$0xff]  ;;  %s399_s30 = scalar_lea.vmem [#allocation2], %s835_s16  ;;  %s1009_s16 = sshll.u32 %s1072_s21, 4  ;;  %s1010_s16 = int_to_ptr.vmem [resolvable:$false] %s1009_s16 }
  0x1e   : > { %413 = vadd.xlane.f32.xlu0 %v412_v1  ;;  %s754_s12 = sshll.u32 %s399_s30, 4  ;;  %s1011_s22 = scalar_lea.vmem %s1010_s16, 256  ;;  %s1304_s12 = int_to_ptr.vmem [resolvable:$true] %s754_s12 }
  0x1f   : > { %v418_v3 = vsel %vm411_vm0, %v417_v2, 0.0  ;;  %939 = vmatpush3.bf16.msra.mxu0 %v938_v41  ;;  %v843_v2 = vld [vmem:[%s1353_s8] ss:$0 sm:$0xff]  ;;  %s1005_s29 = scalar_lea.vmem %s1304_s12, 128  ;;  %p1012_p0 = scmp.lt.s32.totalorder %s1304_s12, %s1010_s16 }
  0x20   : > { %940 = vmatprep.subr.bf16.mxu0 %v1071_v5  ;;  %p1006_p11 = scmp.ne.s32.totalorder %s1304_s12, %s1005_s29  ;;  %p1013_p1 = scmp.lt.s32.totalorder %s1011_s22, %s1005_s29 }
  0x22   : > { %419 = vadd.xlane.f32.xlu0 %v418_v3  ;;  %p1007_p12 = pnand %p1006_p11, %p1171_p5  ;;  %p1014_p2 = por %p1013_p1, %p1012_p0 }
  0x23   : > { %942 = vmatpush3.bf16.msra.mxu0 %v941_v44 }
  0x24   : > { %943 = vmatprep.subr.bf16.mxu0 %v1071_v5  ;;  %p1008_p13 = pneg %p1007_p12 }
  0x26   : > { %p1015_p3 = pnand %p1014_p2, %p1008_p13 }
  0x27   : > { %945 = vmatpush3.bf16.msra.mxu0 %v944_v47 }
  0x28   : > { %946 = vmatprep.subr.bf16.mxu0 %v1071_v5 }
  0x2b   : > { %948 = vmatpush3.bf16.msra.mxu0 %v947_v50 }
  0x2c   : > { %949 = vmatprep.subr.bf16.mxu0 %v1071_v5 }
  0x2f   : > { %951 = vmatpush3.bf16.msra.mxu0 %v950_v53 }
  0x30   : > { %952 = vmatprep.subr.bf16.mxu0 %v1071_v5 }
  0x33   : > { %954 = vmatpush3.bf16.msra.mxu0 %v953_v56 }
  0xab   : > { %v414_v6 = vpop.xlane.xlu0 %413 }
  0xac   : > { %v416_v7 = vmul.f32 0.03125, %v414_v6 }
  0xae   : > { %v422_v9 = vmul.f32 %v416_v7, %v416_v7  ;;  %v425_v14 = vsub.f32 %v410_v0, %v416_v7 }
  0xaf   : > { %v420_v8 = vpop.xlane.xlu0 %419 }
  0xb0   : > { %v421_v10 = vmul.f32 0.03125, %v420_v8 }
  0xb2   : > { %v423_v11 = vsub.f32 %v421_v10, %v422_v9 }
  0xb4   : > { %v424_v12 = vmax.f32 %v423_v11, 0.0 }
  0xb6   : > { %v426_v13 = vadd.f32 1e-05, %v424_v12 }
  0xb8   : > { %997 = vrsqrt.f32 %v426_v13 }
  0xc2   : > { %v998_v15 = vpop.eup %997 }
  0xc3   : > { %v428_v17 = vmul.f32 %v998_v15, %v425_v14 }
  0xc5   : > { %v436_v21 = vmul.f32 %v837_v16, %v428_v17 }
  0xc7   : > { %v1208_v22 = vadd.f32 %v838_v18, %v436_v21 }
  0xc9   : > { %875 = vmatpush3.msra.mxu1 %v1208_v22 }
  0xca   : > { %877 = vmatmul.mubr.msk.f32.vlgmr.msra.gmra.mrb[0].mxu1 %vm447_vm2, %v445_v23  ;;  %925 = vmatprep.subr.bf16.mxu1 %v1071_v5 }
  0xcb   : > { %927 = vmatpush3.bf16.msra.mxu1 %v926_v24  ;;  %887 = vmatprep.mubr.msk.f32.mxu1 %vm1070_vm1, %v1069_v4 }
  0xcc   : > { %928 = vmatprep.subr.bf16.mxu1 %v1071_v5 }
  0xcf   : > { %930 = vmatpush3.bf16.msra.mxu1 %v929_v27 }
 0x19d   : > { %v517_v29 = vpop.f32.mrb[0].mxu1 }
 0x19e   : > { %v518_v30 = vadd.f32 %v517_v29, %v446_v28  ;;  %v878_v31 = vpop.f32.mrb[1].mxu1 }
 0x1a0   : > { %v521_v32 = vmax.f32 %v518_v30, 0.0 }
 0x1a2   : > { %888 = vmatmul.mubr.msk.f32.vlgmr.msra.gmra.mrb[2].mxu1 %vm411_vm0, %v521_v32 }
 0x275   : > { %v602_v58 = vpop.f32.mrb[2].mxu1 }
 0x276   : > { %v603_v59 = vadd.f32 %v840_v57, %v602_v58  ;;  %v889_v60 = vpop.f32.mrb[3].mxu1 }
 0x278   : > { %v842_v61 = vmul.f32 -1.442695, %v603_v59 }
 0x27a   : > { %999 = vpow2.f32 %v842_v61 }
 0x284   : > { %v1000_v62 = vpop.eup %999 }
 0x285   : > { %v609_v63 = vadd.f32 1.0, %v1000_v62 }
 0x287   : > { %1001 = vrcp.f32 %v609_v63 }
 0x291   : > { %v1002_v0 = vpop.eup %1001 }
 0x292   : > { %v612_v1 = vmul.f32 %v1002_v0, %v603_v59 }
 0x294   : > { %923 = vmatmul.mubr.f32.vlgmr.msra.gmra.mrb[0].mxu0 %v612_v1 }
 0x367   : > { %v702_v3 = vpop.f32.mrb[0].mxu0 }
 0x368   : > { %v703_v4 = vadd.f32 %v843_v2, %v702_v3  ;;  %v924_v5 = vpop.f32.mrb[1].mxu0 }
 0x36a   : > { %v706_v6 = vadd.f32 %v703_v4, %v1208_v22  ;;  %v845_v22 = vld [vmem:[%s1355_s10] ss:$0 sm:$0xff] }
 0x36c   : > { %v707_v7 = vsel %vm411_vm0, %v706_v6, 0.0  ;;  %v711_v8 = vmul.f32 %v706_v6, %v706_v6 }
 0x36d   : > { %708 = vadd.xlane.f32.xlu1 %v707_v7 }
 0x36e   : > { %v712_v9 = vsel %vm411_vm0, %v711_v8, 0.0 }
 0x371   : > { %713 = vadd.xlane.f32.xlu1 %v712_v9 }
 0x3fa   : > { %v709_v10 = vpop.xlane.xlu1 %708 }
 0x3fb   : > { %v710_v11 = vmul.f32 0.03125, %v709_v10 }
 0x3fd   : > { %v716_v13 = vmul.f32 %v710_v11, %v710_v11  ;;  %v719_v18 = vsub.f32 %v706_v6, %v710_v11 }
 0x3fe   : > { %v714_v12 = vpop.xlane.xlu1 %713 }
 0x3ff   : > { %v715_v14 = vmul.f32 0.03125, %v714_v12 }
 0x401   : > { %v717_v15 = vsub.f32 %v715_v14, %v716_v13 }
 0x403   : > { %v718_v16 = vmax.f32 %v717_v15, 0.0 }
 0x405   : > { %v720_v17 = vadd.f32 1e-05, %v718_v16 }
 0x407   : > { %1003 = vrsqrt.f32 %v720_v17 }
 0x411   : > { %v1004_v19 = vpop.eup %1003 }
 0x412   : > { %v722_v21 = vmul.f32 %v1004_v19, %v719_v18 }
 0x414   : > { %v730_v23 = vmul.f32 %v844_v20, %v722_v21 }
 0x416   : > { %v738_v24 = vadd.f32 %v845_v22, %v730_v23 }
 0x418   : > { %739 = vst.msk [vmem:[%s399_s30] sm:$0xff] %vm411_vm0, %v738_v24 }
 0x419   : > { %1018 = shalt.err (!%p1015_p3)
}
 0x41a   : > { %s1019_s15 = scalar_lea.hbm %s1302_s1, 128  ;;  %s1023_s30 = scalar_lea.hbm %s1356_s11, 256 }
 0x41b   : > { %p1020_p4 = scmp.ne.s32.totalorder %s1302_s1, %s1019_s15  ;;  %p1024_p9 = scmp.lt.u32.totalorder %s1302_s1, %s1356_s11 }
 0x41c   : > { %p1025_p10 = scmp.lt.u32.totalorder %s1023_s30, %s1019_s15  ;;  %p1027_p12 = scmp.lt.u32.totalorder %s1019_s15, %s1302_s1 }
 0x41d   : > { %p1021_p7 = pnand %p1020_p4, %p1171_p5 }
 0x41e   : > { %p1026_p11 = por %p1025_p10, %p1024_p9 }
 0x41f   : > { %p1022_p8 = pneg %p1021_p7 }
 0x420   : > { %p1028_p13 = por %p1027_p12, %p1026_p11 }
 0x422   : > { %p1029_p0 = pnand %p1028_p13, %p1022_p8 }
 0x424   : > { %1032 = shalt.err (!%p1029_p0)
}
 0x425   : > { %955 = dma.vmem_to_hbm [thread:$0]  (%p1171_p5), %s1304_s12, 128, %s1302_s1, %s741_s0  }
 0x426 PF: > { %p961_p1 = scmp.ge.s32.totalorder %s1067_s20, 2  ;;  %s766_s29 = sand.u32 1, %s1055_s17  }
 0x427   : > { %s767_s21 = scalar_lea.sflag [#allocation3], %s766_s29 }
 0x428   : > { %p958_p2 = pnand %p961_p1, %p1175_p6 }
 0x42a   : > { %1050 = dma.done.wait (!%p958_p2), %s767_s21, 128  }
 0x42b   : > { %1052 = vsyncadd (!%p958_p2), %s767_s21, 4294967168  ;;  %p21_p3 = scmp.ge.s32.totalorder %s1158_s23, 4   ;;  %s1363_s17 = smov %s1059_s18 }
 0x42c   : > { %s1364_s18 = smov %s1063_s19  ;;  %s1365_s19 = smov %s1169_s26 }
 0x42d   : > { %s1366_s20 = smov %s1158_s23  ;;  %23 = sbr.rel (!%p21_p3) target bundleno = 6 (0x6), region = 105 }
 0x434   :  { %772 = vsyncpa [#allocation3], 1 }
 0x435   :  { %774 = vsyncpa [#allocation3 + $0x1], 1 }

</bundles_post_ra>
